<compile_context>
chip_gen: v7x
topology: tpu7x:2x2x1
jax: 0.10.0
libtpu: 0.0.40
codegen_flags: <defaults>
</compile_context>

<pallas_src>
import functools
import math

import jax
import jax.numpy as jnp
from jax.experimental import pallas as pl
from jax.experimental.pallas import tpu as pltpu

LANE = 128
LEAKY_SLOPE = 0.01  # nn.LeakyReLU default negative_slope


def _round_up(n, m):
    return ((n + m - 1) // m) * m


def _pad_axis(a, axis, target):
    pad = target - a.shape[axis]
    if pad == 0:
        return a
    widths = [(0, 0)] * a.ndim
    widths[axis] = (0, pad)
    return jnp.pad(a, widths)


def mlp_kernel(x_ref, w1_ref, b1_ref, w2_ref, b2_ref, o_ref):
    # fc1 on MXU: bf16 inputs, f32 accumulate.
    h = jnp.dot(x_ref[...], w1_ref[...], preferred_element_type=jnp.float32)
    # Bias + LeakyReLU in f32 on the VPU (dropout p=0.0 is a no-op).
    h = h + b1_ref[...]
    h = jnp.where(h > 0, h, jnp.float32(LEAKY_SLOPE) * h)
    # fc2 on MXU: downcast the activation to bf16 for the MXU, accumulate in f32.
    y = jnp.dot(h.astype(w2_ref.dtype), w2_ref[...],
                preferred_element_type=jnp.float32)
    y = y + b2_ref[...]
    o_ref[...] = y.astype(o_ref.dtype)


@functools.partial(jax.jit, static_argnames=("block_m",))
def two_layer_perceptron(x, w1, b1, w2, b2, *, block_m=512):
    """Fused forward pass of TwoLayerPerceptron.

    x : (B, input_size)             float32
    w1: (hidden_size, input_size)   float32  (nn.Linear layout)
    b1: (hidden_size,)
    w2: (output_size, hidden_size)
    b2: (output_size,)
    returns (B, output_size) in x.dtype
    """
    B, in_size = x.shape
    hid_size = w1.shape[0]
    out_size = w2.shape[0]

    # Lane-dense (128-multiple) feature dims. Zero padding is exact for this net:
    # padded input features hit zero weights, padded hidden units get zero bias so
    # LeakyReLU(0) = 0 and they contribute nothing to fc2, padded outputs are sliced off.
    in_p = _round_up(in_size, LANE)
    hid_p = _round_up(hid_size, LANE)
    out_p = _round_up(out_size, LANE)

    # Batch tile: as large as useful, multiple of 16 (bf16 sublane packing).
    tm = min(block_m, _round_up(B, 16))
    b_p = _round_up(B, tm)

    # Pad + cast ONCE in the wrapper (not per grid step inside the kernel).
    x_p = _pad_axis(_pad_axis(x, 1, in_p), 0, b_p).astype(jnp.bfloat16)
    w1_t = _pad_axis(_pad_axis(w1.T, 0, in_p), 1, hid_p).astype(jnp.bfloat16)
    w2_t = _pad_axis(_pad_axis(w2.T, 0, hid_p), 1, out_p).astype(jnp.bfloat16)
    b1_p = _pad_axis(b1.reshape(1, -1), 1, hid_p).astype(jnp.float32)
    b2_p = _pad_axis(b2.reshape(1, -1), 1, out_p).astype(jnp.float32)

    grid = (b_p // tm,)

    # VMEM budget: resident bf16 weights + f32 biases, plus 2-deep pipelined
    # bf16 x-tiles and f32 out-tiles. Clamp to [32 MiB, 64 MiB] so it is safe on
    # v7x's 64 MiB-per-TC VMEM while still allowing big batch tiles on v5e/v6e.
    resident = 2 * (in_p * hid_p + hid_p * out_p) + 4 * (hid_p + out_p)
    per_step = 2 * (tm * in_p * 2 + tm * out_p * 4)
    vmem_limit = int(min(max(2 * (resident + per_step), 32 << 20), 64 << 20))

    flops = 2 * b_p * (in_p * hid_p + hid_p * out_p)
    bytes_accessed = (x_p.size * 2 + w1_t.size * 2 + w2_t.size * 2
                      + b1_p.size * 4 + b2_p.size * 4 + b_p * out_p * 4)

    out_padded = pl.pallas_call(
        mlp_kernel,
        out_shape=jax.ShapeDtypeStruct((b_p, out_p), x.dtype),
        grid=grid,
        in_specs=[
            pl.BlockSpec((tm, in_p), lambda i: (i, 0)),       # x tile (pipelined)
            pl.BlockSpec((in_p, hid_p), lambda i: (0, 0)),    # W1 (VMEM-resident)
            pl.BlockSpec((1, hid_p), lambda i: (0, 0)),       # b1 (resident)
            pl.BlockSpec((hid_p, out_p), lambda i: (0, 0)),   # W2 (resident)
            pl.BlockSpec((1, out_p), lambda i: (0, 0)),       # b2 (resident)
        ],
        out_specs=pl.BlockSpec((tm, out_p), lambda i: (i, 0)),  # lane-dense output
        compiler_params=pltpu.CompilerParams(
            dimension_semantics=("parallel",),
            vmem_limit_bytes=vmem_limit,
        ),
        cost_estimate=pl.CostEstimate(
            flops=flops, transcendentals=0, bytes_accessed=bytes_accessed),
    )(x_p, w1_t, b1_p, w2_t, b2_p)

    return out_padded[:B, :out_size]


def init_linear(kw, kb, in_features, out_features, dtype=jnp.float32):
    # Matches nn.Linear's U(-1/sqrt(fan_in), 1/sqrt(fan_in)) init.
    bound = 1.0 / math.sqrt(in_features)
    w = jax.random.uniform(kw, (out_features, in_features), dtype, -bound, bound)
    b = jax.random.uniform(kb, (out_features,), dtype, -bound, bound)
    return w, b


def reference_forward(x, w1, b1, w2, b2):
    h = x @ w1.T + b1
    h = jnp.where(h > 0, h, 0.01 * h)
    return h @ w2.T + b2


if __name__ == "__main__":
    # NOTE: these demo sizes are launch-overhead dominated; real deployments should
    # use batch / feature dims that are multiples of 128 for the kernel to pay off.
    batch, input_size, hidden_size, output_size = 8, 32, 64, 16

    key = jax.random.PRNGKey(0)
    kx, kw1, kb1, kw2, kb2 = jax.random.split(key, 5)

    x = jax.random.normal(kx, (batch, input_size), jnp.float32)
    w1, b1 = init_linear(kw1, kb1, input_size, hidden_size)
    w2, b2 = init_linear(kw2, kb2, hidden_size, output_size)

    out = two_layer_perceptron(x, w1, b1, w2, b2)
    out = jax.block_until_ready(out)

    ref = reference_forward(x, w1, b1, w2, b2)
    assert out.shape == (batch, output_size)
    # Tolerance relaxed relative to the pure-f32 reference because the kernel feeds
    # the MXU bf16 inputs (f32 accumulation).
    max_err = float(jnp.max(jnp.abs(out - ref)))
    assert jnp.allclose(out, ref, atol=5e-2, rtol=5e-2), f"max abs err = {max_err}"

    print("KERNEL_OK")
</pallas_src>

<mosaic_0001>
module attributes {stable_mosaic.version = 11 : i64} {
  func.func @mlp_kernel(%arg0: i32, %arg1: memref<16x128xbf16, #tpu.memory_space<vmem>>, %arg2: memref<128x128xbf16, #tpu.memory_space<vmem>>, %arg3: memref<1x128xf32, #tpu.memory_space<vmem>>, %arg4: memref<128x128xbf16, #tpu.memory_space<vmem>>, %arg5: memref<1x128xf32, #tpu.memory_space<vmem>>, %arg6: memref<16x128xf32, #tpu.memory_space<vmem>>) attributes {dimension_semantics = [#tpu.dimension_semantics<parallel>], iteration_bounds = array<i64: 1>, scalar_prefetch = 0 : i64, scratch_operands = 0 : i64, tpu.core_type = #tpu.core_type<tc>, window_params = [{transform_indices = @transform_0, window_bounds = array<i64: 16, 128>}, {pipeline_mode = #tpu.pipeline_mode<synchronous>, transform_indices = @transform_1, window_bounds = array<i64: 128, 128>}, {pipeline_mode = #tpu.pipeline_mode<synchronous>, transform_indices = @transform_2, window_bounds = array<i64: 1, 128>}, {pipeline_mode = #tpu.pipeline_mode<synchronous>, transform_indices = @transform_3, window_bounds = array<i64: 128, 128>}, {pipeline_mode = #tpu.pipeline_mode<synchronous>, transform_indices = @transform_4, window_bounds = array<i64: 1, 128>}, {transform_indices = @transform_5, window_bounds = array<i64: 16, 128>}]} {
    %c0 = arith.constant 0 : index
    %c0_0 = arith.constant 0 : index
    %0 = vector.load %arg1[%c0, %c0_0] : memref<16x128xbf16, #tpu.memory_space<vmem>>, vector<16x128xbf16>
    %c0_1 = arith.constant 0 : index
    %c0_2 = arith.constant 0 : index
    %1 = vector.load %arg2[%c0_1, %c0_2] : memref<128x128xbf16, #tpu.memory_space<vmem>>, vector<128x128xbf16>
    %cst = arith.constant dense<0.000000e+00> : vector<16x128xf32>
    %2 = tpu.matmul %0, %1, %cst {dimension_numbers = #tpu.dot_dimension_numbers<[1], [0], [0], [1], [0, 0, 1, 1], [], []>} : vector<16x128xbf16>, vector<128x128xbf16>, vector<16x128xf32> -> vector<16x128xf32>
    %c0_3 = arith.constant 0 : index
    %c0_4 = arith.constant 0 : index
    %3 = vector.load %arg3[%c0_3, %c0_4] : memref<1x128xf32, #tpu.memory_space<vmem>>, vector<1x128xf32>
    %4 = vector.broadcast %3 : vector<1x128xf32> to vector<16x128xf32>
    %5 = arith.addf %2, %4 : vector<16x128xf32>
    %cst_5 = arith.constant 0.000000e+00 : f32
    %6 = vector.broadcast %cst_5 : f32 to vector<16x128xf32>
    %7 = arith.cmpf ogt, %5, %6 : vector<16x128xf32>
    %cst_6 = arith.constant 0.00999999977 : f32
    %8 = vector.broadcast %cst_6 : f32 to vector<16x128xf32>
    %9 = arith.mulf %8, %5 : vector<16x128xf32>
    %10 = arith.select %7, %5, %9 : vector<16x128xi1>, vector<16x128xf32>
    %11 = arith.truncf %10 : vector<16x128xf32> to vector<16x128xbf16>
    %c0_7 = arith.constant 0 : index
    %c0_8 = arith.constant 0 : index
    %12 = vector.load %arg4[%c0_7, %c0_8] : memref<128x128xbf16, #tpu.memory_space<vmem>>, vector<128x128xbf16>
    %cst_9 = arith.constant dense<0.000000e+00> : vector<16x128xf32>
    %13 = tpu.matmul %11, %12, %cst_9 {dimension_numbers = #tpu.dot_dimension_numbers<[1], [0], [0], [1], [0, 0, 1, 1], [], []>} : vector<16x128xbf16>, vector<128x128xbf16>, vector<16x128xf32> -> vector<16x128xf32>
    %c0_10 = arith.constant 0 : index
    %c0_11 = arith.constant 0 : index
    %14 = vector.load %arg5[%c0_10, %c0_11] : memref<1x128xf32, #tpu.memory_space<vmem>>, vector<1x128xf32>
    %15 = vector.broadcast %14 : vector<1x128xf32> to vector<16x128xf32>
    %16 = arith.addf %13, %15 : vector<16x128xf32>
    %c0_12 = arith.constant 0 : index
    %c0_13 = arith.constant 0 : index
    %17 = vector.load %arg6[%c0_12, %c0_13] : memref<16x128xf32, #tpu.memory_space<vmem>>, vector<16x128xf32>
    tpu.vector_store %arg6[%c0_12, %c0_13], %16 {strides = array<i32>} : memref<16x128xf32, #tpu.memory_space<vmem>>, vector<16x128xf32>,
    return
  }
  func.func @transform_0(%arg0: i32) -> (i32, i32) {
    %c0_i32 = arith.constant 0 : i32
    %c0_i32_0 = arith.constant 0 : i32
    return %arg0, %c0_i32 : i32, i32
  }
  func.func @transform_1(%arg0: i32) -> (i32, i32) {
    %c0_i32 = arith.constant 0 : i32
    %c0_i32_0 = arith.constant 0 : i32
    %c0_i32_1 = arith.constant 0 : i32
    return %c0_i32, %c0_i32_0 : i32, i32
  }
  func.func @transform_2(%arg0: i32) -> (i32, i32) {
    %c0_i32 = arith.constant 0 : i32
    %c0_i32_0 = arith.constant 0 : i32
    %c0_i32_1 = arith.constant 0 : i32
    return %c0_i32, %c0_i32_0 : i32, i32
  }
  func.func @transform_3(%arg0: i32) -> (i32, i32) {
    %c0_i32 = arith.constant 0 : i32
    %c0_i32_0 = arith.constant 0 : i32
    %c0_i32_1 = arith.constant 0 : i32
    return %c0_i32, %c0_i32_0 : i32, i32
  }
  func.func @transform_4(%arg0: i32) -> (i32, i32) {
    %c0_i32 = arith.constant 0 : i32
    %c0_i32_0 = arith.constant 0 : i32
    %c0_i32_1 = arith.constant 0 : i32
    return %c0_i32, %c0_i32_0 : i32, i32
  }
  func.func @transform_5(%arg0: i32) -> (i32, i32) {
    %c0_i32 = arith.constant 0 : i32
    %c0_i32_0 = arith.constant 0 : i32
    return %arg0, %c0_i32 : i32, i32
  }
}

</mosaic_0001>

<bundles_post_ra>
// kernel: two_layer_perceptron.1
= control target key start
LH: loop header
LB: loop body
LE: loop exit
PB: predicated region body
PF: predicated region fallthrough
CT: control target
= control target key end

     0   :  { %v362_v0 = vmov 0.0   ;;  %vm363_vm0 = vmmov 0   ;;  %s457_s1 = inlined_call_operand.vmem [shape: bf16[128,128], index: 1, kind: input, shape index: {}]   ;;  %s458_s3 = inlined_call_operand.vmem [shape: bf16[128,128], index: 3, kind: input, shape index: {}]   ;;  %s459_s0 = inlined_call_operand.vmem [shape: bf16[16,128], index: 0, kind: input, shape index: {}]   ;;  %s460_s2 = inlined_call_operand.vmem [shape: f32[1,128], index: 2, kind: input, shape index: {}]   ;;  %s461_s4 = inlined_call_operand.vmem [shape: f32[1,128], index: 4, kind: input, shape index: {}]   ;;  %s462_s5 = inlined_call_operand.vmem [shape: f32[16,128], index: 5, kind: output, shape index: {}]  }
   0x1   :  { %303 = vmatprep.subr.bf16.mxu0 %v362_v0  ;;  %v345_v1 = vld [vmem:[%s457_s1] sm:$0xff]   ;;  %319 = vmatprep.mubr.msk.bf16.mxu0 %vm363_vm0, %v362_v0  ;;  %v346_v2 = vld [vmem:[%s457_s1 + $0x8] sm:$0xff]   ;;  %v347_v3 = vld [vmem:[%s457_s1 + $0x10] sm:$0xff]  }
   0x2   :  { %323 = vmatprep.subr.bf16.mxu1 %v362_v0  ;;  %339 = vmatprep.mubr.msk.bf16.mxu1 %vm363_vm0, %v362_v0  ;;  %v354_v4 = vld [vmem:[%s458_s3] sm:$0xff]   ;;  %v348_v5 = vld [vmem:[%s457_s1 + $0x18] sm:$0xff]   ;;  %v355_v6 = vld [vmem:[%s458_s3 + $0x8] sm:$0xff]  }
   0x3   :  { %304 = vmatpush3.bf16.msra.mxu0 %v345_v1  ;;  %324 = vmatpush3.bf16.msra.mxu1 %v354_v4  ;;  %v349_v7 = vld [vmem:[%s457_s1 + $0x20] sm:$0xff]   ;;  %v356_v8 = vld [vmem:[%s458_s3 + $0x10] sm:$0xff]   ;;  %v350_v9 = vld [vmem:[%s457_s1 + $0x28] sm:$0xff]  }
   0x4   :  { %305 = vmatprep.subr.bf16.mxu0 %v362_v0  ;;  %325 = vmatprep.subr.bf16.mxu1 %v362_v0  ;;  %v357_v10 = vld [vmem:[%s458_s3 + $0x18] sm:$0xff]   ;;  %v351_v11 = vld [vmem:[%s457_s1 + $0x30] sm:$0xff]   ;;  %v358_v12 = vld [vmem:[%s458_s3 + $0x20] sm:$0xff]  }
   0x5   :  { %v352_v13 = vld [vmem:[%s457_s1 + $0x38] sm:$0xff]   ;;  %v359_v14 = vld [vmem:[%s458_s3 + $0x28] sm:$0xff]   ;;  %v353_v15 = vld [vmem:[%s459_s0] sm:$0xff]  }
   0x6   :  { %v360_v16 = vld [vmem:[%s458_s3 + $0x30] sm:$0xff]   ;;  %v361_v17 = vld [vmem:[%s458_s3 + $0x38] sm:$0xff]   ;;  %v266_v18 = vld [vmem:[%s460_s2] ss:$0 sm:$0xff] }
   0x7   :  { %306 = vmatpush3.bf16.msra.mxu0 %v346_v2  ;;  %326 = vmatpush3.bf16.msra.mxu1 %v355_v6  ;;  %v276_v30 = vld [vmem:[%s461_s4] ss:$0 sm:$0xff] }
   0x8   :  { %307 = vmatprep.subr.bf16.mxu0 %v362_v0  ;;  %327 = vmatprep.subr.bf16.mxu1 %v362_v0 }
   0xb   :  { %308 = vmatpush3.bf16.msra.mxu0 %v347_v3  ;;  %328 = vmatpush3.bf16.msra.mxu1 %v356_v8 }
   0xc   :  { %309 = vmatprep.subr.bf16.mxu0 %v362_v0  ;;  %329 = vmatprep.subr.bf16.mxu1 %v362_v0 }
   0xf   :  { %310 = vmatpush3.bf16.msra.mxu0 %v348_v5  ;;  %330 = vmatpush3.bf16.msra.mxu1 %v357_v10 }
  0x10   :  { %311 = vmatprep.subr.bf16.mxu0 %v362_v0  ;;  %331 = vmatprep.subr.bf16.mxu1 %v362_v0 }
  0x13   :  { %312 = vmatpush3.bf16.msra.mxu0 %v349_v7  ;;  %332 = vmatpush3.bf16.msra.mxu1 %v358_v12 }
  0x14   :  { %313 = vmatprep.subr.bf16.mxu0 %v362_v0  ;;  %333 = vmatprep.subr.bf16.mxu1 %v362_v0 }
  0x17   :  { %314 = vmatpush3.bf16.msra.mxu0 %v350_v9  ;;  %334 = vmatpush3.bf16.msra.mxu1 %v359_v14 }
  0x18   :  { %315 = vmatprep.subr.bf16.mxu0 %v362_v0  ;;  %335 = vmatprep.subr.bf16.mxu1 %v362_v0 }
  0x1b   :  { %316 = vmatpush3.bf16.msra.mxu0 %v351_v11  ;;  %336 = vmatpush3.bf16.msra.mxu1 %v360_v16 }
  0x1c   :  { %317 = vmatprep.subr.bf16.mxu0 %v362_v0  ;;  %337 = vmatprep.subr.bf16.mxu1 %v362_v0 }
  0x1f   :  { %318 = vmatpush3.bf16.msra.mxu0 %v352_v13  ;;  %338 = vmatpush3.bf16.msra.mxu1 %v361_v17 }
  0x22   :  { %320 = vmatmul.mubr.bf16.vlgmr.msra.gmra.mrb[0].mxu0 %v353_v15 }
  0xf5   :  { %v134_v19 = vpop.f32.mrb[0].mxu0 }
  0xf6   :  { %v135_v20 = vadd.f32 %v266_v18, %v134_v19  ;;  %v321_v21 = vpop.f32.mrb[1].mxu0 }
  0xf7   :  { %v137_v22 = vpop.f32.mrb[2].mxu0 }
  0xf8   :  { %v143_v23 = vmul.f32 0.01, %v135_v20  ;;  %v138_v24 = vadd.f32 %v266_v18, %v137_v22  ;;  %v322_v25 = vpop.f32.mrb[3].mxu0  ;;  %vm141_vm1 = vcmp.gt.f32.partialorder %v135_v20, 0.0 }
  0xfa   :  { %vm142_vm2 = vcmp.gt.f32.partialorder %v138_v24, 0.0  ;;  %v144_v26 = vmul.f32 0.01, %v138_v24  ;;  %v145_v27 = vsel %vm141_vm1, %v135_v20, %v143_v23 }
  0xfc   :  { %v146_v28 = vsel %vm142_vm2, %v138_v24, %v144_v26 }
  0xfd   :  { %v147_v29 = vpack.c.bf16 %v146_v28, %v145_v27 }
  0xff   :  { %340 = vmatmul.mubr.bf16.vlgmr.msra.gmra.mrb[0].mxu1 %v147_v29 }
 0x1d2   :  { %v253_v31 = vpop.f32.mrb[0].mxu1 }
 0x1d3   :  { %v254_v32 = vadd.f32 %v276_v30, %v253_v31  ;;  %v341_v33 = vpop.f32.mrb[1].mxu1 }
 0x1d4   :  { %v256_v34 = vpop.f32.mrb[2].mxu1 }
 0x1d5   :  { %260 = vst [vmem:[%s462_s5] sm:$0xff] %v254_v32  ;;  %v257_v35 = vadd.f32 %v276_v30, %v256_v34  ;;  %v342_v36 = vpop.f32.mrb[3].mxu1 }
 0x1d7   :  { %261 = vst [vmem:[%s462_s5 + $0x8] sm:$0xff] %v257_v35 }

</bundles_post_ra>
